<compile_context>
chip_gen: v5e
topology: v5e:2x2
jax: 0.10.0
libtpu: 0.0.40
codegen_flags: <defaults>
</compile_context>

<pallas_src>
import numpy as np
import jax
import jax.numpy as jnp
from jax.experimental import pallas as pl
from jax.experimental.pallas import tpu as pltpu

# ---- constants hard-coded in the torch module's __init__ -------------------
TEMPERATURE      = (4.0, 0.1)
SCALE_MULTIPLIER = (1000.0, 10000.0)
WHOLE_ITER       = 10000
NUM_OPTIONS      = 11                                   # index = torch.arange(11)
KPAD             = 16                                   # options padded to 2 sublane groups
GROUP            = 32                                   # mask width
ORDER            = [24, 26, 25, 10, 27, 13, 22, 14, 9, 29, 12]   # make_mask order
NEG_BIG          = -1.0e30   # K-pad logit; stays finite after *(scale/tau) <= 1e5
TB_CAP           = 4096      # lanes per batch tile (sweep 2048-8192 per chip)


def _round_up(v, m):
    return ((v + m - 1) // m) * m


def _make_mask_options_T():
    """mask_options^T padded to (GROUP, KPAD). torch: mask_options[0, t, ORDER[:t]] = 0."""
    m = np.ones((NUM_OPTIONS, GROUP), np.float32)
    for t in range(NUM_OPTIONS):
        m[t, ORDER[:t]] = 0.0
    mT = np.zeros((GROUP, KPAD), np.float32)            # padded K columns are 0
    mT[:, :NUM_OPTIONS] = m.T
    return mT


# ---- Pallas kernel ----------------------------------------------------------
def _mask_kernel(params_ref, mask_ref, x_ref, g_ref, o_ref):
    # params_ref: SMEM (2,)          f32  -> [scale/tau, 1/tau]
    # mask_ref:   VMEM (GROUP, KPAD) f32  mask_options^T (padded cols are 0)
    # x_ref:      VMEM (KPAD, tb)    f32  gate logits, batch on the 128-lane axis
    # g_ref:      VMEM (KPAD, tb)    f32  Gumbel(0,1) noise
    # o_ref:      VMEM (GROUP, tb)   f32  backprop_gate (transposed)
    a = params_ref[0]                                   # scale / tau
    b = params_ref[1]                                   # 1 / tau

    # gumbel-softmax (soft, hard=False) over the K gate options (lane-parallel)
    z = x_ref[...] * a + g_ref[...] * b                 # (KPAD, tb)
    z = z - jnp.max(z, axis=0, keepdims=True)           # stable softmax
    e = jnp.exp(z)                                      # padded K rows -> 0
    p = e / jnp.sum(e, axis=0, keepdims=True)           # choices, (KPAD, tb)

    # choices @ mask_options on the MXU: (GROUP, KPAD) @ (KPAD, tb) -> (GROUP, tb)
    o_ref[...] = jnp.dot(mask_ref[...], p, preferred_element_type=jnp.float32)


# ---- wrapper ----------------------------------------------------------------
def differentiable_mask_forward(x, *, iteration=1, key=None, gumbel=None,
                                transposed_output=False):
    """Training-branch forward.

    x: (B, 1, NUM_OPTIONS) (or (B, NUM_OPTIONS)) gate logits.
    Returns (B, GROUP) float32; with transposed_output=True returns (GROUP, B)
    (the kernel's native lane-dense layout, skipping the HBM transpose).
    """
    assert x.shape[-1] == NUM_OPTIONS
    x2 = x.reshape(-1, NUM_OPTIONS).astype(jnp.float32)
    B = x2.shape[0]

    # Per-step schedule -> runtime SMEM scalars (no recompile per iteration).
    frac = iteration / WHOLE_ITER
    tau = TEMPERATURE[0] + (TEMPERATURE[1] - TEMPERATURE[0]) * frac
    scale = SCALE_MULTIPLIER[0] + (SCALE_MULTIPLIER[1] - SCALE_MULTIPLIER[0]) * frac
    params = jnp.array([scale / tau, 1.0 / tau], dtype=jnp.float32)

    # Gumbel(0,1) noise (host-side jax.random: works on TPU and in interpret mode).
    if gumbel is None:
        if key is None:
            key = jax.random.PRNGKey(0)
        gumbel = jax.random.gumbel(key, (B, NUM_OPTIONS), dtype=jnp.float32)

    # Lane-dense transposed layout: batch on the 128-lane axis; K padded to 16.
    b128 = _round_up(B, 128)
    tb = min(TB_CAP, b128)
    if b128 > 128 and b128 // tb < 2:        # give v7x's 2nd TensorCore a tile
        tb = _round_up(b128 // 2, 128)
    bp = _round_up(b128, tb)
    grid = (bp // tb,)

    x_t = jnp.pad(x2.T, ((0, KPAD - NUM_OPTIONS), (0, bp - B)),
                  constant_values=NEG_BIG)                    # (KPAD, bp)
    g_t = jnp.pad(gumbel.astype(jnp.float32).T,
                  ((0, KPAD - NUM_OPTIONS), (0, bp - B)))     # (KPAD, bp), pads = 0
    mask_t = jnp.asarray(_make_mask_options_T())              # (GROUP, KPAD)

    out_t = pl.pallas_call(
        _mask_kernel,
        out_shape=jax.ShapeDtypeStruct((GROUP, bp), jnp.float32),
        grid=grid,
        in_specs=[
            pl.BlockSpec(memory_space=pltpu.MemorySpace.SMEM),   # [scale/tau, 1/tau]
            pl.BlockSpec((GROUP, KPAD), lambda i: (0, 0)),       # mask_options^T
            pl.BlockSpec((KPAD, tb), lambda i: (0, i)),          # gate logits
            pl.BlockSpec((KPAD, tb), lambda i: (0, i)),          # gumbel noise
        ],
        out_specs=pl.BlockSpec((GROUP, tb), lambda i: (0, i)),
        compiler_params=pltpu.CompilerParams(
            dimension_semantics=("parallel",)),   # shard batch tiles across TCs
    )(params, mask_t, x_t, g_t)

    if transposed_output:
        return out_t[:, :B]                                   # (GROUP, B)
    return out_t[:, :B].T                                     # (B, GROUP)


if __name__ == "__main__":
    key = jax.random.PRNGKey(0)
    k_x, k_noise = jax.random.split(key)
    B = 2
    # gate input, analogous to the torch module's `x` of shape (B, 1, 11)
    x = 0.01 * jax.random.normal(k_x, (B, 1, NUM_OPTIONS), dtype=jnp.float32)
    gumbel = jax.random.gumbel(k_noise, (B, NUM_OPTIONS), dtype=jnp.float32)

    out = differentiable_mask_forward(x, iteration=1, gumbel=gumbel)
    out = jax.block_until_ready(out)

    assert out.shape == (B, GROUP) and out.dtype == jnp.float32
    assert bool(jnp.all(jnp.isfinite(out)))

    # pure-JAX reference of the torch training branch (same noise)
    frac = 1 / WHOLE_ITER
    tau_ref = TEMPERATURE[0] + (TEMPERATURE[1] - TEMPERATURE[0]) * frac
    scale_ref = SCALE_MULTIPLIER[0] + (SCALE_MULTIPLIER[1] - SCALE_MULTIPLIER[0]) * frac
    choices = jax.nn.softmax(
        (x.reshape(B, NUM_OPTIONS) * scale_ref + gumbel) / tau_ref, axis=-1)
    mask_options = jnp.asarray(_make_mask_options_T()[:, :NUM_OPTIONS].T)  # (11, 32)
    ref = choices @ mask_options                                           # (B, 32)
    assert bool(jnp.allclose(out, ref, atol=1e-4, rtol=1e-4))

    # columns never zeroed by any mask option must equal sum(softmax) ~= 1
    never_zero = jnp.array([c for c in range(GROUP) if c not in ORDER])
    assert bool(jnp.all(jnp.abs(out[:, never_zero] - 1.0) < 1e-4))
    print("KERNEL_OK")
</pallas_src>

<mosaic_0001>
module attributes {stable_mosaic.version = 11 : i64} {
  func.func @_mask_kernel(%arg0: i32, %arg1: memref<2xf32, #tpu.memory_space<smem>>, %arg2: memref<32x16xf32, #tpu.memory_space<vmem>>, %arg3: memref<16x128xf32, #tpu.memory_space<vmem>>, %arg4: memref<16x128xf32, #tpu.memory_space<vmem>>, %arg5: memref<32x128xf32, #tpu.memory_space<vmem>>) attributes {dimension_semantics = [#tpu.dimension_semantics<parallel>], iteration_bounds = array<i64: 1>, scalar_prefetch = 0 : i64, scratch_operands = 0 : i64, tpu.core_type = #tpu.core_type<tc>, window_params = [{transform_indices = @transform_0, window_bounds = array<i64: 2>}, {pipeline_mode = #tpu.pipeline_mode<synchronous>, transform_indices = @transform_1, window_bounds = array<i64: 32, 16>}, {transform_indices = @transform_2, window_bounds = array<i64: 16, 128>}, {transform_indices = @transform_3, window_bounds = array<i64: 16, 128>}, {transform_indices = @transform_4, window_bounds = array<i64: 32, 128>}]} {
    %c0 = arith.constant 0 : index
    %0 = memref.load %arg1[%c0] : memref<2xf32, #tpu.memory_space<smem>>
    %c1 = arith.constant 1 : index
    %1 = memref.load %arg1[%c1] : memref<2xf32, #tpu.memory_space<smem>>
    %c0_0 = arith.constant 0 : index
    %c0_1 = arith.constant 0 : index
    %2 = vector.load %arg3[%c0_0, %c0_1] : memref<16x128xf32, #tpu.memory_space<vmem>>, vector<16x128xf32>
    %3 = vector.broadcast %0 : f32 to vector<16x128xf32>
    %4 = arith.mulf %2, %3 : vector<16x128xf32>
    %c0_2 = arith.constant 0 : index
    %c0_3 = arith.constant 0 : index
    %5 = vector.load %arg4[%c0_2, %c0_3] : memref<16x128xf32, #tpu.memory_space<vmem>>, vector<16x128xf32>
    %6 = vector.broadcast %1 : f32 to vector<16x128xf32>
    %7 = arith.mulf %5, %6 : vector<16x128xf32>
    %8 = arith.addf %4, %7 : vector<16x128xf32>
    %cst = arith.constant dense<0xFF800000> : vector<128xf32>
    %9 = vector.multi_reduction <maximumf>, %8, %cst [0] : vector<16x128xf32> to vector<128xf32>
    %10 = vector.shape_cast %9 : vector<128xf32> to vector<1x128xf32>
    %11 = vector.broadcast %10 : vector<1x128xf32> to vector<16x128xf32>
    %12 = arith.subf %8, %11 : vector<16x128xf32>
    %13 = math.exp %12 : vector<16x128xf32>
    %cst_4 = arith.constant dense<0.000000e+00> : vector<128xf32>
    %14 = vector.multi_reduction <add>, %13, %cst_4 [0] : vector<16x128xf32> to vector<128xf32>
    %15 = vector.shape_cast %14 : vector<128xf32> to vector<1x128xf32>
    %16 = vector.broadcast %15 : vector<1x128xf32> to vector<16x128xf32>
    %17 = arith.divf %13, %16 : vector<16x128xf32>
    %c0_5 = arith.constant 0 : index
    %c0_6 = arith.constant 0 : index
    %18 = vector.load %arg2[%c0_5, %c0_6] : memref<32x16xf32, #tpu.memory_space<vmem>>, vector<32x16xf32>
    %cst_7 = arith.constant dense<0.000000e+00> : vector<32x128xf32>
    %19 = tpu.matmul %18, %17, %cst_7 {dimension_numbers = #tpu.dot_dimension_numbers<[1], [0], [0], [1], [0, 0, 1, 1], [], []>} : vector<32x16xf32>, vector<16x128xf32>, vector<32x128xf32> -> vector<32x128xf32>
    %c0_8 = arith.constant 0 : index
    %c0_9 = arith.constant 0 : index
    %20 = vector.load %arg5[%c0_8, %c0_9] : memref<32x128xf32, #tpu.memory_space<vmem>>, vector<32x128xf32>
    tpu.vector_store %arg5[%c0_8, %c0_9], %19 {strides = array<i32>} : memref<32x128xf32, #tpu.memory_space<vmem>>, vector<32x128xf32>,
    return
  }
  func.func @transform_0(%arg0: i32) -> i32 {
    %c0_i32 = arith.constant 0 : i32
    %c0_i32_0 = arith.constant 0 : i32
    return %c0_i32 : i32
  }
  func.func @transform_1(%arg0: i32) -> (i32, i32) {
    %c0_i32 = arith.constant 0 : i32
    %c0_i32_0 = arith.constant 0 : i32
    %c0_i32_1 = arith.constant 0 : i32
    return %c0_i32, %c0_i32_0 : i32, i32
  }
  func.func @transform_2(%arg0: i32) -> (i32, i32) {
    %c0_i32 = arith.constant 0 : i32
    %c0_i32_0 = arith.constant 0 : i32
    return %c0_i32, %arg0 : i32, i32
  }
  func.func @transform_3(%arg0: i32) -> (i32, i32) {
    %c0_i32 = arith.constant 0 : i32
    %c0_i32_0 = arith.constant 0 : i32
    return %c0_i32, %arg0 : i32, i32
  }
  func.func @transform_4(%arg0: i32) -> (i32, i32) {
    %c0_i32 = arith.constant 0 : i32
    %c0_i32_0 = arith.constant 0 : i32
    return %c0_i32, %arg0 : i32, i32
  }
}

</mosaic_0001>

<bundles_post_ra>
// kernel: tpu_custom_call.1
= control target key start
LH: loop header
LB: loop body
LE: loop exit
PB: predicated region body
PF: predicated region fallthrough
CT: control target
= control target key end

     0   :  { %9 = vsyncpa [#allocation4], 0  ;;  %s270_s0 = inlined_call_operand.vmem [shape: f32[2], index: 0, kind: input, shape index: {}]   ;;  %s271_s1 = inlined_call_operand.vmem [shape: f32[32,16], index: 1, kind: input, shape index: {}]   ;;  %s272_s2 = inlined_call_operand.vmem [shape: f32[16,128], index: 2, kind: input, shape index: {}]   ;;  %s273_s3 = inlined_call_operand.vmem [shape: f32[16,128], index: 3, kind: input, shape index: {}]   ;;  %s274_s4 = inlined_call_operand.hbm [shape: f32[32,128], index: 4, kind: output, shape index: {}]  }
   0x1   :  { %10 = vsyncpa [#allocation3], 0  ;;  %s16_s17 = sshll.u32 %s270_s0, 4  ;;  %s211_s18 = smov [#allocation2]   ;;  %s17_s17 = int_to_ptr.vmem [resolvable:$true] %s16_s17 }
   0x2   :  { %19 = dma.vmem_to_smem %s17_s17, 16, %s211_s18, [#allocation4]  }
   0x3   :  { %207 = dma.done.wait [#allocation4], 16  }
   0x4   :  { %208 = vsyncadd [#allocation4], 4294967280 }
   0x5   :  { %30 = sfence }
   0x6   :  { %s31_s19 = sld [smem:[#allocation2]]  ;;  %v33_v0 = vld [vmem:[%s272_s2] sm:$0xff]  ;;  %v34_v1 = vld [vmem:[%s272_s2 + $0x8] sm:$0xff]  ;;  %v83_v44 = vld [vmem:[%s271_s1 + $0x10] sm:$0xff]  ;;  %vm85_vm4 = vcmask 130048   ;;  %s212_s8 = smov [#allocation5]  }
   0x7   :  { %s150_s20 = sld [smem:[#allocation2 + $0x1]]  ;;  %v38_v2 = vld [vmem:[%s273_s3] sm:$0xff]  ;;  %v39_v3 = vld [vmem:[%s273_s3 + $0x8] sm:$0xff]  ;;  %v84_v45 = vld [vmem:[%s271_s1 + $0x18] sm:$0xff]  ;;  %s135_s9 = sshll.u32 %s212_s8, 4  ;;  %s136_s9 = int_to_ptr.vmem [resolvable:$true] %s135_s9 }
   0x8   :  { %v81_v46 = vld [vmem:[%s271_s1] sm:$0xff]  ;;  %v82_v47 = vld [vmem:[%s271_s1 + $0x8] sm:$0xff]  ;;  %s137_s12 = sshll.u32 %s274_s4, 4  ;;  %s213_s1 = smov 128   ;;  %s138_s12 = int_to_ptr.hbm [resolvable:$true] %s137_s12 }
   0x9   :  { %s214_s13 = smov 8  }
   0xc   :  { %v35_v4 = vstv %s31_s19 }
   0xd   :  { %v36_v5 = vmul.f32 %v35_v4, %v33_v0  ;;  %v37_v6 = vmul.f32 %v35_v4, %v34_v1  ;;  %v40_v7 = vstv %s150_s20 }
   0xe   :  { %v41_v8 = vmul.f32 %v40_v7, %v38_v2  ;;  %v42_v9 = vmul.f32 %v40_v7, %v39_v3 }
  0x10   :  { %v43_v10 = vadd.f32 %v41_v8, %v36_v5  ;;  %v44_v11 = vadd.f32 %v42_v9, %v37_v6 }
  0x12   :  { %v45_v12 = vmax.f32 %v43_v10, %v44_v11 }
  0x14   :  { %v46_v13 = vrot.slane %v45_v12, 4 }
  0x16   :  { %v47_v14 = vmax.f32 %v45_v12, %v46_v13 }
  0x18   :  { %v48_v15 = vrot.slane %v47_v14, 2 }
  0x1a   :  { %v49_v16 = vmax.f32 %v47_v14, %v48_v15 }
  0x1c   :  { %v50_v17 = vrot.slane %v49_v16, 1 }
  0x1e   :  { %v51_v18 = vmax.f32 %v49_v16, %v50_v17 }
  0x20   :  { %v52_v19 = vsub.f32 %v43_v10, %v51_v18  ;;  %v53_v20 = vsub.f32 %v44_v11, %v51_v18 }
  0x22   :  { %v54_v21 = vmul.f32 1.442695, %v52_v19  ;;  %v56_v22 = vmul.f32 1.442695, %v53_v20 }
  0x24   :  { %165 = vpow2.f32 %v54_v21 }
  0x25   :  { %167 = vpow2.f32 %v56_v22 }
  0x2a   :  { %v166_v23 = vpop.eup %165 }
  0x2b   :  { %v168_v24 = vpop.eup %167 }
  0x2c   :  { %v58_v25 = vadd.f32 %v168_v24, %v166_v23 }
  0x2e   :  { %v59_v26 = vrot.slane %v58_v25, 4 }
  0x30   :  { %v60_v27 = vadd.f32 %v59_v26, %v58_v25 }
  0x32   :  { %v61_v28 = vrot.slane %v60_v27, 2 }
  0x34   :  { %v62_v29 = vadd.f32 %v61_v28, %v60_v27 }
  0x36   :  { %v63_v30 = vrot.slane %v62_v29, 1 }
  0x38   :  { %v64_v31 = vadd.f32 %v63_v30, %v62_v29 }
  0x3a   :  { %169 = vrcp.f32 %v64_v31  ;;  %v76_v34 = vand.u32 2147483648, %v64_v31  ;;  %vm70_vm0 = vweird.f32 %v64_v31  ;;  %v74_v36 = vand.u32 2147483647, %v64_v31 }
  0x3c   :  { %v77_v38 = vor.u32 1.1754944e-38, %v76_v34  ;;  %vm75_vm3 = vcmp.eq.f32.partialorder %v74_v36, 8.507059e+37 }
  0x40   :  { %v170_v32 = vpop.eup %169 }
  0x41   :  { %v66_v33 = vmul.f32 %v170_v32, %v64_v31  ;;  %vm71_vm1 = vweird.f32 %v170_v32 }
  0x42   :  { %vm72_vm2 = vmor %vm70_vm0, %vm71_vm1 }
  0x43   :  { %v67_v35 = vsub.f32 1.0, %v66_v33 }
  0x45   :  { %v68_v37 = vmul.f32 %v170_v32, %v67_v35 }
  0x47   :  { %v69_v39 = vadd.f32 %v170_v32, %v68_v37 }
  0x49   :  { %v73_v40 = vsel %vm72_vm2, %v170_v32, %v69_v39 }
  0x4a   :  { %v78_v41 = vsel %vm75_vm3, %v77_v38, %v73_v40 }
  0x4b   :  { %v80_v42 = vmul.f32 %v168_v24, %v78_v41  ;;  %v79_v43 = vmul.f32 %v166_v23, %v78_v41 }
  0x4d   :  { %156 = vmatpush.msra.mxu2 %v80_v42  ;;  %157 = vmatpush.msra.mxu3 %v80_v42 }
  0x4e   :  { %112 = vmatpush.msra.mxu0 %v80_v42  ;;  %155 = vmatpush.msra.mxu1 %v80_v42 }
  0x4f   :  { %159 = vmatpush.msra.mxu2 %v79_v43  ;;  %160 = vmatpush.msra.mxu3 %v79_v43 }
  0x50   :  { %153 = vmatmul.msk.f32.vlgmr.msra.gmra.mxu2 %vm85_vm4, %v83_v44  ;;  %154 = vmatmul.msk.f32.vlgmr.msra.gmra.mxu3 %vm85_vm4, %v84_v45 }
  0x51   :  { %113 = vmatpush.msra.mxu0 %v79_v43  ;;  %158 = vmatpush.msra.mxu1 %v79_v43 }
  0x52   :  { %151 = vmatmul.msk.f32.vlgmr.msra.gmra.mxu0 %vm85_vm4, %v81_v46  ;;  %152 = vmatmul.msk.f32.vlgmr.msra.gmra.mxu1 %vm85_vm4, %v82_v47 }
  0xcf   :  { %v115_v48 = vpop.f32.mrf.mxu0  ;;  %v118_v49 = vpop.f32.mrf.mxu1 }
  0xd0   :  { %127 = vst [vmem:[#allocation5] sm:$0xff] %v115_v48 }
  0xd1   :  { %128 = vst [vmem:[#allocation5 + $0x8] sm:$0xff] %v118_v49 }
  0xd3   :  { %v121_v50 = vpop.f32.mrf.mxu2  ;;  %v124_v51 = vpop.f32.mrf.mxu3 }
  0xd4   :  { %129 = vst [vmem:[#allocation5 + $0x10] sm:$0xff] %v121_v50 }
  0xd5   :  { %130 = vst [vmem:[#allocation5 + $0x18] sm:$0xff] %v124_v51 }
  0xd6   :  { %143 = dma.vmem_to_hbm [thread:$0]  %s136_s9, 512, %s138_s12, [#allocation3], %s213_s1, %s213_s1, %s214_s13  }
  0xd7   :  { %209 = dma.done.wait [#allocation3], 512  }
  0xd8   :  { %210 = vsyncadd [#allocation3], 4294966784 }
  0xd9   :  { %148 = vsyncpa [#allocation3], 1 }
  0xda   :  { %149 = vsyncpa [#allocation4], 1 }

</bundles_post_ra>
